<compile_context>
chip_gen: v7x
topology: tpu7x:2x2x1
jax: 0.10.0
libtpu: 0.0.40
codegen_flags: <defaults>
</compile_context>

<pallas_src>
import functools

import jax
import jax.numpy as jnp
from jax.experimental import pallas as pl
from jax.experimental.pallas import tpu as pltpu

_LANE = 128        # vreg lane width
_SUB = 8           # vreg sublane height (f32)
_MAX_LANES = 4096  # per-tile lane-extent cap (bounds the unrolled lane-group adds)


def _budgets():
    """Returns (vmem_limit_bytes, per-tile byte budget, resident fast-path budget)."""
    cap = 64 << 20                                    # conservative: v7x physical VMEM
    try:
        info = pltpu.get_tpu_info()
        cap = int(getattr(info, "vmem_capacity_bytes", cap)) or cap
    except Exception:
        pass
    vmem_limit = min((cap * 3) // 4, 96 << 20)        # ~48 MiB on v7x, 96 MiB on v5e/v6e
    tile_bytes = (6 << 20) if cap >= (100 << 20) else (3 << 20)
    resident_bytes = vmem_limit // 4                  # fused path: x + out + headroom
    return vmem_limit, tile_bytes, resident_bytes


def _plan_tiles(bc, hw, tile_bytes):
    """Pick a (t_bc, t_hw) block for a (bc, hw) f32 array; lane-dense first."""
    if hw <= _LANE:
        hw_cap = hw                                   # full dim (only legal choice < 128)
    else:
        hw_cap = min((hw // _LANE) * _LANE, _MAX_LANES)
    if bc * hw_cap * 4 <= tile_bytes:
        return bc, hw_cap
    rows = tile_bytes // (hw_cap * 4)
    if rows >= _SUB:
        return min(bc, (rows // _SUB) * _SUB), hw_cap
    t_bc = bc if bc < _SUB else _SUB
    t_hw = min(hw_cap, max(_LANE, (tile_bytes // (t_bc * 4)) // _LANE * _LANE))
    return t_bc, t_hw


# --------------------------------------------------------------------------
# Kernels
# --------------------------------------------------------------------------
def _fused_kernel(x_ref, w1_ref, b1_ref, w2_ref, b2_ref, o_ref, *, inv_hw):
    """Fast path: pool + excitation MLP + scale on a fully VMEM-resident x."""
    x = x_ref[...]                                                   # (B, C, HW)
    pooled = jnp.sum(x.astype(jnp.float32), axis=-1) * inv_hw        # (B, C)
    h = jnp.dot(pooled, w1_ref[...],
                preferred_element_type=jnp.float32) + b1_ref[...]
    h = jnp.maximum(h, 0.0)                                          # ReLU
    z = jnp.dot(h, w2_ref[...],
                preferred_element_type=jnp.float32) + b2_ref[...]
    g = 1.0 / (1.0 + jnp.exp(-z))                                    # Sigmoid
    o_ref[...] = (x.astype(jnp.float32) * g[:, :, None]).astype(o_ref.dtype)


def _pool_kernel(x_ref, mean_ref, acc_ref, *, hw, t_hw, acc_w, ragged):
    """Streamed global average pool over lane tiles of the (B*C, HW) view.

    acc_ref holds per-lane partial sums (steady state = VPU adds only); the
    single cross-lane reduction happens once in the last-tile epilogue.
    """
    k = pl.program_id(1)

    @pl.when(k == 0)
    def _():
        acc_ref[...] = jnp.zeros_like(acc_ref)

    x = x_ref[...].astype(jnp.float32)                               # (t_bc, t_hw)
    if ragged:                                                       # mask tail lanes
        col = k * t_hw + jax.lax.broadcasted_iota(jnp.int32, x.shape, 1)
        x = jnp.where(col < hw, x, 0.0)

    part = x[:, :acc_w]
    for j in range(1, t_hw // acc_w):                                # static, <= 32 adds
        part = part + x[:, j * acc_w:(j + 1) * acc_w]
    acc_ref[...] += part

    @pl.when(k == pl.num_programs(1) - 1)
    def _():
        mean_ref[...] = jnp.sum(acc_ref[...], axis=-1, keepdims=True) * (1.0 / hw)


def _excite_kernel(p_ref, w1_ref, b1_ref, w2_ref, b2_ref, g_ref):
    """Tiny excitation MLP: Linear -> ReLU -> Linear -> Sigmoid (runs once)."""
    h = jnp.dot(p_ref[...], w1_ref[...],
                preferred_element_type=jnp.float32) + b1_ref[...]
    h = jnp.maximum(h, 0.0)
    z = jnp.dot(h, w2_ref[...],
                preferred_element_type=jnp.float32) + b2_ref[...]
    g_ref[...] = 1.0 / (1.0 + jnp.exp(-z))


def _scale_kernel(x_ref, g_ref, o_ref):
    """Rescale one lane-dense (t_bc, t_hw) tile; the (t_bc, 1) gate broadcasts
    along lanes (cheap splat, no relayout). Ragged tails are dropped by the
    pipeline's masked writeback."""
    o_ref[...] = x_ref[...] * g_ref[...]


# --------------------------------------------------------------------------
# Wrapper
# --------------------------------------------------------------------------
@functools.partial(jax.jit, static_argnames=("tile_bytes", "resident_bytes", "vmem_limit"))
def se_block(x_nchw, w1, b1, w2, b2, *,
             tile_bytes=None, resident_bytes=None, vmem_limit=None):
    """SEBlock forward.

    x_nchw : (B, C, H, W)
    w1     : (C, C//r)   float32 (transposed vs. torch nn.Linear.weight)
    b1     : (C//r,)     float32
    w2     : (C//r, C)   float32
    b2     : (C,)        float32
    """
    B, C, H, W = x_nchw.shape
    hid = w1.shape[1]
    HW = H * W
    BC = B * C

    d_limit, d_tile, d_resident = _budgets()
    vmem_limit = d_limit if vmem_limit is None else vmem_limit
    tile_bytes = d_tile if tile_bytes is None else tile_bytes
    resident_bytes = d_resident if resident_bytes is None else resident_bytes

    b1_2d = b1.reshape(1, hid)
    b2_2d = b2.reshape(1, C)
    x_bytes = BC * HW * x_nchw.dtype.itemsize

    # ---------- Fast path: everything resident in VMEM, one kernel ----------
    if x_bytes <= resident_bytes:
        out = pl.pallas_call(
            functools.partial(_fused_kernel, inv_hw=1.0 / HW),
            out_shape=jax.ShapeDtypeStruct((B, C, HW), x_nchw.dtype),
            compiler_params=pltpu.CompilerParams(vmem_limit_bytes=vmem_limit),
        )(x_nchw.reshape(B, C, HW), w1, b1_2d, w2, b2_2d)
        return out.reshape(B, C, H, W)

    # ---------- Streamed path: (B*C, HW) view, blocked on both axes ----------
    x2 = x_nchw.reshape(BC, HW)                     # free reshape (row-major)
    t_bc, t_hw = _plan_tiles(BC, HW, tile_bytes)
    n_bc = pl.cdiv(BC, t_bc)
    n_hw = pl.cdiv(HW, t_hw)
    acc_w = min(_LANE, t_hw)
    ragged = (HW % t_hw) != 0
    # TODO(synk): when n_bc == 1 on v7x, additionally split the HW tiles across
    # the two TensorCores (per-half accumulators + combine) so the pooling pass
    # also uses both cores.

    # Phase A: streamed pooled mean, one value per (b, c) row.
    pooled = pl.pallas_call(
        functools.partial(_pool_kernel, hw=HW, t_hw=t_hw, acc_w=acc_w, ragged=ragged),
        out_shape=jax.ShapeDtypeStruct((BC, 1), jnp.float32),
        grid=(n_bc, n_hw),
        in_specs=[pl.BlockSpec((t_bc, t_hw), lambda i, k: (i, k))],
        out_specs=pl.BlockSpec((t_bc, 1), lambda i, k: (i, 0)),
        scratch_shapes=[pltpu.VMEM((t_bc, acc_w), jnp.float32)],
        compiler_params=pltpu.CompilerParams(
            dimension_semantics=("parallel", "arbitrary"),
            vmem_limit_bytes=vmem_limit),
    )(x2)

    # Excitation MLP: tiny, runs once, everything resident.
    gate = pl.pallas_call(
        _excite_kernel,
        out_shape=jax.ShapeDtypeStruct((B, C), jnp.float32),
        compiler_params=pltpu.CompilerParams(vmem_limit_bytes=vmem_limit),
    )(pooled.reshape(B, C), w1, b1_2d, w2, b2_2d)

    # Phase B: re-stream x, rescale. No input/output alias: x is not donated
    # here and a forced alias would insert a defensive HBM copy.
    out2 = pl.pallas_call(
        _scale_kernel,
        out_shape=jax.ShapeDtypeStruct((BC, HW), x_nchw.dtype),
        grid=(n_bc, n_hw),
        in_specs=[pl.BlockSpec((t_bc, t_hw), lambda i, k: (i, k)),
                  pl.BlockSpec((t_bc, 1), lambda i, k: (i, 0))],
        out_specs=pl.BlockSpec((t_bc, t_hw), lambda i, k: (i, k)),
        compiler_params=pltpu.CompilerParams(
            dimension_semantics=("parallel", "parallel"),
            vmem_limit_bytes=vmem_limit),
    )(x2, gate.reshape(BC, 1).astype(x_nchw.dtype))

    return out2.reshape(B, C, H, W)


def se_block_ref(x, w1, b1, w2, b2):
    """Pure-JAX reference mirroring the PyTorch module."""
    s = jnp.mean(x, axis=(2, 3))                    # AdaptiveAvgPool2d(1)
    s = jnp.maximum(s @ w1 + b1, 0.0)               # Linear + ReLU
    s = jax.nn.sigmoid(s @ w2 + b2)                 # Linear + Sigmoid
    return x * s[:, :, None, None]


def _make_inputs(key, B, C, H, W, reduction=4):
    hid = max(1, C // reduction)
    kx, k1, k2, k3, k4 = jax.random.split(key, 5)
    x = jax.random.normal(kx, (B, C, H, W), dtype=jnp.float32)
    w1 = jax.random.normal(k1, (C, hid), dtype=jnp.float32) * 0.1
    b1 = jax.random.normal(k2, (hid,), dtype=jnp.float32) * 0.1
    w2 = jax.random.normal(k3, (hid, C), dtype=jnp.float32) * 0.1
    b2 = jax.random.normal(k4, (C,), dtype=jnp.float32) * 0.1
    return x, w1, b1, w2, b2


if __name__ == "__main__":
    key = jax.random.PRNGKey(0)

    # 1) Fast (fully VMEM-resident) fused path at the module's natural shapes.
    x, w1, b1, w2, b2 = _make_inputs(key, 2, 8, 16, 16)
    y = jax.block_until_ready(se_block(x, w1, b1, w2, b2))
    y_ref = se_block_ref(x, w1, b1, w2, b2)
    assert y.shape == x.shape
    assert jnp.allclose(y, y_ref, atol=1e-5, rtol=1e-5), "fast path mismatch"

    # 2) Streamed path (forced via tiny budgets): exercises blocked B*C tiles,
    #    a multi-tile HW axis with a ragged (masked) tail, and the MLP kernel.
    x2, w1b, b1b, w2b, b2b = _make_inputs(key, 2, 12, 30, 30)
    y2 = jax.block_until_ready(
        se_block(x2, w1b, b1b, w2b, b2b, tile_bytes=32 * 1024, resident_bytes=1))
    y2_ref = se_block_ref(x2, w1b, b1b, w2b, b2b)
    assert y2.shape == x2.shape
    assert jnp.allclose(y2, y2_ref, atol=1e-5, rtol=1e-5), "streamed path mismatch"

    print("KERNEL_OK")
</pallas_src>

<mosaic_0001>
module attributes {stable_mosaic.version = 11 : i64} {
  func.func @_fused_kernel(%arg0: memref<2x8x256xf32, #tpu.memory_space<vmem>>, %arg1: memref<8x2xf32, #tpu.memory_space<vmem>>, %arg2: memref<1x2xf32, #tpu.memory_space<vmem>>, %arg3: memref<2x8xf32, #tpu.memory_space<vmem>>, %arg4: memref<1x8xf32, #tpu.memory_space<vmem>>, %arg5: memref<2x8x256xf32, #tpu.memory_space<vmem>>) attributes {dimension_semantics = [], scalar_prefetch = 0 : i64, scratch_operands = 0 : i64, tpu.core_type = #tpu.core_type<tc>} {
    %c0 = arith.constant 0 : index
    %c0_0 = arith.constant 0 : index
    %c0_1 = arith.constant 0 : index
    %0 = vector.load %arg0[%c0, %c0_0, %c0_1] : memref<2x8x256xf32, #tpu.memory_space<vmem>>, vector<2x8x256xf32>
    %cst = arith.constant dense<0.000000e+00> : vector<2x8xf32>
    %1 = vector.multi_reduction <add>, %0, %cst [2] : vector<2x8x256xf32> to vector<2x8xf32>
    %cst_2 = arith.constant 3.906250e-03 : f32
    %2 = vector.broadcast %cst_2 : f32 to vector<2x8xf32>
    %3 = arith.mulf %1, %2 : vector<2x8xf32>
    %c0_3 = arith.constant 0 : index
    %c0_4 = arith.constant 0 : index
    %4 = vector.load %arg1[%c0_3, %c0_4] : memref<8x2xf32, #tpu.memory_space<vmem>>, vector<8x2xf32>
    %cst_5 = arith.constant dense<0.000000e+00> : vector<2x2xf32>
    %5 = tpu.matmul %3, %4, %cst_5 {dimension_numbers = #tpu.dot_dimension_numbers<[1], [0], [0], [1], [0, 0, 1, 1], [], []>} : vector<2x8xf32>, vector<8x2xf32>, vector<2x2xf32> -> vector<2x2xf32>
    %c0_6 = arith.constant 0 : index
    %c0_7 = arith.constant 0 : index
    %6 = vector.load %arg2[%c0_6, %c0_7] : memref<1x2xf32, #tpu.memory_space<vmem>>, vector<1x2xf32>
    %7 = vector.broadcast %6 : vector<1x2xf32> to vector<2x2xf32>
    %8 = arith.addf %5, %7 : vector<2x2xf32>
    %cst_8 = arith.constant 0.000000e+00 : f32
    %9 = vector.broadcast %cst_8 : f32 to vector<2x2xf32>
    %10 = arith.maximumf %8, %9 : vector<2x2xf32>
    %c0_9 = arith.constant 0 : index
    %c0_10 = arith.constant 0 : index
    %11 = vector.load %arg3[%c0_9, %c0_10] : memref<2x8xf32, #tpu.memory_space<vmem>>, vector<2x8xf32>
    %cst_11 = arith.constant dense<0.000000e+00> : vector<2x8xf32>
    %12 = tpu.matmul %10, %11, %cst_11 {dimension_numbers = #tpu.dot_dimension_numbers<[1], [0], [0], [1], [0, 0, 1, 1], [], []>} : vector<2x2xf32>, vector<2x8xf32>, vector<2x8xf32> -> vector<2x8xf32>
    %c0_12 = arith.constant 0 : index
    %c0_13 = arith.constant 0 : index
    %13 = vector.load %arg4[%c0_12, %c0_13] : memref<1x8xf32, #tpu.memory_space<vmem>>, vector<1x8xf32>
    %14 = vector.broadcast %13 : vector<1x8xf32> to vector<2x8xf32>
    %15 = arith.addf %12, %14 : vector<2x8xf32>
    %cst_14 = arith.constant 0.000000e+00 : f32
    %16 = vector.broadcast %cst_14 : f32 to vector<2x8xf32>
    %17 = arith.subf %16, %15 : vector<2x8xf32>
    %18 = math.exp %17 : vector<2x8xf32>
    %cst_15 = arith.constant 1.000000e+00 : f32
    %19 = vector.broadcast %cst_15 : f32 to vector<2x8xf32>
    %20 = arith.addf %19, %18 : vector<2x8xf32>
    %cst_16 = arith.constant 1.000000e+00 : f32
    %21 = vector.broadcast %cst_16 : f32 to vector<2x8xf32>
    %22 = arith.divf %21, %20 : vector<2x8xf32>
    %23 = vector.shape_cast %22 : vector<2x8xf32> to vector<2x8x1xf32>
    %24 = vector.broadcast %23 : vector<2x8x1xf32> to vector<2x8x256xf32>
    %25 = arith.mulf %0, %24 : vector<2x8x256xf32>
    %c0_17 = arith.constant 0 : index
    %c0_18 = arith.constant 0 : index
    %c0_19 = arith.constant 0 : index
    %26 = vector.load %arg5[%c0_17, %c0_18, %c0_19] : memref<2x8x256xf32, #tpu.memory_space<vmem>>, vector<2x8x256xf32>
    tpu.vector_store %arg5[%c0_17, %c0_18, %c0_19], %25 {strides = array<i32>} : memref<2x8x256xf32, #tpu.memory_space<vmem>>, vector<2x8x256xf32>,
    return
  }
}

</mosaic_0001>

<bundles_post_ra>
// kernel: se_block.1
= control target key start
LH: loop header
LB: loop body
LE: loop exit
PB: predicated region body
PF: predicated region fallthrough
CT: control target
= control target key end

     0   :  { %v271_v6 = vmov 0.0   ;;  %vm272_vm0 = vmmov 0   ;;  %v42_v8 = vlaneseq  ;;  %vm52_vm1 = vcmask 1041409   ;;  %s355_s0 = inlined_call_operand.vmem [shape: f32[2,8,256], index: 0, kind: input, shape index: {}]   ;;  %s356_s1 = inlined_call_operand.vmem [shape: f32[8,2], index: 1, kind: input, shape index: {}]   ;;  %s357_s3 = inlined_call_operand.vmem [shape: f32[2,8], index: 3, kind: input, shape index: {}]   ;;  %s358_s2 = inlined_call_operand.vmem [shape: f32[1,2], index: 2, kind: input, shape index: {}]   ;;  %s359_s4 = inlined_call_operand.vmem [shape: f32[1,8], index: 4, kind: input, shape index: {}]   ;;  %s360_s5 = inlined_call_operand.vmem [shape: f32[2,8,256], index: 5, kind: output, shape index: {}]  }
   0x1   :  { %v306_v0 = vld [vmem:[%s355_s0] sm:$0xff]  ;;  %v311_v1 = vld [vmem:[%s355_s0 + $0x8] sm:$0xff]  ;;  %v316_v2 = vld [vmem:[%s355_s0 + $0x10] sm:$0xff]  ;;  %255 = vmatprep.subr.mxu0 %v271_v6  ;;  %257 = vmatprep.mubr.msk.f32.mxu0 %vm272_vm0, %v271_v6  ;;  %vm54_vm2 = vcmask 64512   ;;  %vm140_vm3 = vcmask 1041408   ;;  %vm136_vm4 = vcmask 15360  }
   0x2   :  { %v24_v3 = vadd.f32 %v311_v1, %v306_v0  ;;  %v323_v4 = vld [vmem:[%s355_s0 + $0x18] sm:$0xff]  ;;  %v32_v7 = vld [vmem:[%s356_s1] sm:$0xff]  ;;  %260 = vmatprep.subr.mxu1 %v271_v6  ;;  %262 = vmatprep.mubr.msk.f32.mxu1 %vm272_vm0, %v271_v6  ;;  %v43_v9 = vand.u32 127, %v42_v8  ;;  %v45_v10 = vshrl.u32 %v42_v8, 7 }
   0x3   :  { %v27_v5 = vadd.f32 %v323_v4, %v316_v2  ;;  %256 = vmatpush3.msra.mxu0 %v32_v7  ;;  %v128_v19 = vld [vmem:[%s357_s3] sm:$0x3] }
   0x4   :  { %25 = vadd.xlane.f32.xlu0 %v24_v3  ;;  %v46_v12 = vsub.s32 %v43_v9, %v45_v10  ;;  %261 = vmatpush3.msk.msra.mxu1 %vm140_vm3, %v128_v19  ;;  %v246_v20 = vld [vmem:[%s358_s2] ss:$0 sm:$0xff]  ;;  %v222_v33 = vsub.s32 0, %v45_v10  ;;  %v229_v36 = vsub.s32 1, %v45_v10 }
   0x5   :  { %v248_v25 = vld [vmem:[%s359_s4] ss:$0 sm:$0xff] }
   0x8   :  { %28 = vadd.xlane.f32.xlu0 %v27_v5 }
  0x91   :  { %v26_v11 = vpop.xlane.xlu0 %25 }
  0x92   :  { %v30_v13 = vmul.f32 0.00390625, %v26_v11 }
  0x94   :  { %v47_v16 = vrot.slane %v30_v13, %v46_v12 }
  0x95   :  { %v29_v14 = vpop.xlane.xlu0 %28 }
  0x96   :  { %v31_v15 = vmul.f32 0.00390625, %v29_v14 }
  0x98   :  { %v51_v17 = vrot.slane %v31_v15, %v46_v12 }
  0x9a   :  { %v53_v18 = vsel %vm52_vm1, %v51_v17, %v47_v16 }
  0x9b   :  { %258 = vmatmul.mubr.msk.f32.vlgmr.msra.gmra.mrb[0].mxu0 %vm54_vm2, %v53_v18 }
 0x16e   :  { %v123_v21 = vpop.f32.mrb[0].mxu0 }
 0x16f   :  { %v124_v22 = vadd.f32 %v246_v20, %v123_v21  ;;  %v259_v23 = vpop.f32.mrb[1].mxu0 }
 0x171   :  { %v127_v24 = vmax.f32 %v124_v22, 0.0 }
 0x173   :  { %263 = vmatmul.mubr.msk.f32.vlgmr.msra.gmra.mrb[0].mxu1 %vm136_vm4, %v127_v24 }
 0x246   :  { %v210_v26 = vpop.f32.mrb[0].mxu1 }
 0x247   :  { %v211_v27 = vadd.f32 %v248_v25, %v210_v26  ;;  %v264_v28 = vpop.f32.mrb[1].mxu1 }
 0x249   :  { %v214_v29 = vsub.f32 0.0, %v211_v27 }
 0x24b   :  { %v215_v30 = vmul.f32 1.442695, %v214_v29 }
 0x24d   :  { %267 = vpow2.f32 %v215_v30 }
 0x257   :  { %v268_v31 = vpop.eup %267 }
 0x258   :  { %v217_v32 = vadd.f32 1.0, %v268_v31 }
 0x25a   :  { %269 = vrcp.f32 %v217_v32 }
 0x264   :  { %v270_v34 = vpop.eup %269 }
 0x265   :  { %v223_v35 = vrot.slane %v270_v34, %v222_v33  ;;  %v230_v37 = vrot.slane %v270_v34, %v229_v36 }
 0x267   :  { %225 = vbcast.lane.b32.xlu1 %v223_v35, 256 }
 0x26b   :  { %232 = vbcast.lane.b32.xlu1 %v230_v37, 256 }
 0x2d9   :  { %v226_v38 = vpop.permute.xlu1 %225 }
 0x2da   :  { %v234_v39 = vmul.f32 %v226_v38, %v306_v0  ;;  %v235_v40 = vmul.f32 %v226_v38, %v311_v1 }
 0x2dc   :  { %238 = vst [vmem:[%s360_s5] sm:$0xff] %v234_v39  ;;  %239 = vst [vmem:[%s360_s5 + $0x8] sm:$0xff] %v235_v40 }
 0x2dd   :  { %v233_v41 = vpop.permute.xlu1 %232 }
 0x2de   :  { %v236_v42 = vmul.f32 %v233_v41, %v316_v2  ;;  %v237_v43 = vmul.f32 %v233_v41, %v323_v4 }
 0x2e0   :  { %240 = vst [vmem:[%s360_s5 + $0x10] sm:$0xff] %v236_v42  ;;  %241 = vst [vmem:[%s360_s5 + $0x18] sm:$0xff] %v237_v43 }

</bundles_post_ra>
